<compile_context>
chip_gen: v6e
topology: v6e:2x2x1
jax: 0.10.0
libtpu: 0.0.40
codegen_flags: <defaults>
</compile_context>

<pallas_src>
import functools
import math

import numpy as np
import jax
import jax.numpy as jnp
from jax.experimental import pallas as pl
from jax.experimental.pallas import tpu as pltpu


def _round_up(v, m):
    return (v + m - 1) // m * m


# ----------------------------------------------------------------------------
# Phase 1: scatter-sum over node tiles + pooled GatedLinearBlock on last tile.
# ----------------------------------------------------------------------------
def _scatter_mlp_kernel(eps, exact_scatter, scatter_dtype,
                        batch_ref, x_ref, xres_ref,
                        wpre_ref, bpre_ref, mavg_ref,
                        wg_ref, wv_ref, wpost_ref, bpost_ref, scale_ref,
                        xres_out_ref, pooled_ref):
    f32 = jnp.float32
    i = pl.program_id(0)
    nsteps = pl.num_programs(0)
    B_pad = xres_out_ref.shape[0]
    TN = x_ref.shape[0]

    @pl.when(i == 0)
    def _init():
        xres_out_ref[...] = xres_ref[...]

    # scatter(x, batch, reduce='sum'): one-hot matmul on the MXU, accumulated
    # in f32 into the VMEM-resident output block.
    oh = (batch_ref[...] ==
          jax.lax.broadcasted_iota(jnp.int32, (B_pad, TN), 0))      # [B_pad, TN]
    if exact_scatter:
        # 0/1 one-hot * f32 x with HIGHEST precision is exact (matches the
        # f32 segment-sum up to summation order); still HBM-bound, so free.
        xres_out_ref[...] += jnp.dot(oh.astype(f32), x_ref[...],
                                     preferred_element_type=f32,
                                     precision=jax.lax.Precision.HIGHEST)
    else:
        # bf16 fast path (one-hot is exact in bf16; x is rounded to bf16).
        xres_out_ref[...] += jnp.dot(oh.astype(scatter_dtype),
                                     x_ref[...].astype(scatter_dtype),
                                     preferred_element_type=f32)

    @pl.when(i == nsteps - 1)
    def _finalize():
        xx = xres_out_ref[...]                                      # [B_pad, W]
        # pre: Conv1d(W, W, 1)
        y = jnp.dot(xx, wpre_ref[...], preferred_element_type=f32) + bpre_ref[...]
        # GroupNorm(num_head, W, affine=False) fused via block-averaging matrix
        # (two-pass variance: numerically safe, matches the reference exactly).
        mean = jnp.dot(y, mavg_ref[...], preferred_element_type=f32)
        d = y - mean
        var = jnp.dot(d * d, mavg_ref[...], preferred_element_type=f32)
        y_n = d * jax.lax.rsqrt(var + eps)
        # gate / value: grouped Conv1d as block-diagonal dense; ReLU on gate.
        # TODO(synk): Dropout(0.1) is identity in eval mode; not implemented.
        gate = jnp.maximum(
            jnp.dot(y_n, wg_ref[...], preferred_element_type=f32), 0.0)
        val = jnp.dot(y_n, wv_ref[...], preferred_element_type=f32)
        # post: Conv1d(W*S, W, 1) + ScaleLayer (scale pre-exponentiated).
        out = (jnp.dot(gate * val, wpost_ref[...], preferred_element_type=f32)
               + bpost_ref[...])
        pooled_ref[...] = scale_ref[...] * out


# ----------------------------------------------------------------------------
# Phase 2: gather pooled per-graph message back to (packed) node rows.
#   bidm_ref[r, c*B_pad + b] == 0  <=>  batch[r*pack + c] == b
#   pooled_blk = kron(I_pack, pooled)  (block-diagonal [pack*B_pad, pack*W])
#   => out[r, c*W + w] = pooled[batch[r*pack + c], w]   (single MXU matmul)
# ----------------------------------------------------------------------------
def _gather_kernel(bidm_ref, pooled_ref, out_ref):
    oh = (bidm_ref[...] == 0).astype(jnp.float32)        # exact 0/1
    out_ref[...] = jnp.dot(oh, pooled_ref[...],
                           preferred_element_type=jnp.float32,
                           precision=jax.lax.Precision.HIGHEST)


# ----------------------------------------------------------------------------
# Wrapper
# ----------------------------------------------------------------------------
def virt_message(x, x_res, batch, params, num_head, eps=1e-5,
                 tile_n=512, scatter_dtype=jnp.float32):
    """VirtMessage forward. Returns (out_nodes [N, W], x_res_new [B, W])."""
    N, W = x.shape
    B = x_res.shape[0]
    S_out = params["w_gate"].shape[1]                 # W * width_scale

    exact_scatter = np.dtype(scatter_dtype) == np.dtype(np.float32)

    # Pack factor: node rows per 128-lane output row (lane-dense stores).
    # TODO(synk): when W < 128 and W does not divide 128 we fall back to
    # pack=1 (masked partial stores on the node output).
    pack = 128 // W if (W < 128 and 128 % W == 0) else 1

    B_pad = _round_up(max(B, 8), 8)                   # sublane-aligned batch dim
    align = max(128, 8 * pack)                        # lane-aligned node tile
    TN = _round_up(min(tile_n, max(N, 1)), align)
    N_pad = _round_up(N, TN)
    n_tiles = N_pad // TN
    R_pad = N_pad // pack                             # packed output rows
    TR = TN // pack
    KB = pack * B_pad

    # Padding: extra node rows get batch id B_pad (matches no graph) and zero
    # features; extra graph rows are zero and sliced off on return.
    x_p = jnp.zeros((N_pad, W), jnp.float32).at[:N].set(x.astype(jnp.float32))
    batch_p = jnp.full((N_pad,), B_pad, jnp.int32).at[:N].set(batch.astype(jnp.int32))
    xres_p = jnp.zeros((B_pad, W), jnp.float32).at[:B].set(x_res.astype(jnp.float32))

    batch_row = batch_p.reshape(1, N_pad)             # lane-dense for scatter

    # Phase-2 gather index plane: bid_minus == 0 is the one-hot condition
    # (precomputed in the wrapper so the kernel needs no int mod/div).
    pattern = jnp.arange(KB, dtype=jnp.int32) % B_pad
    bid_minus = (jnp.repeat(batch_p.reshape(R_pad, pack), B_pad, axis=1)
                 - pattern[None, :])                  # [R_pad, KB] int32

    # GroupNorm block-averaging matrix: M[i, j] = (i//Wg == j//Wg) / Wg.
    Wg = W // num_head
    grp = jnp.arange(W, dtype=jnp.int32) // Wg
    m_avg = (grp[:, None] == grp[None, :]).astype(jnp.float32) / float(Wg)

    # ScaleLayer: hoist exp(log_scale) out of the kernel.
    scale_exp = jnp.exp(params["log_scale"]).astype(jnp.float32)

    def _full(shape):
        return pl.BlockSpec(shape, lambda i: (0, 0))

    # ---- phase 1: scatter-sum (reduction over node tiles) + pooled MLP ------
    w_bytes = 4 * (W * W + W + W * W + 2 * W * S_out + S_out * W + W + W)
    cost1 = pl.CostEstimate(
        flops=int(2 * B_pad * N_pad * W
                  + 2 * B_pad * (3 * W * W + 2 * W * S_out + S_out * W)),
        transcendentals=int(B_pad * W),
        bytes_accessed=int(4 * (N_pad * W + N_pad + 3 * B_pad * W) + w_bytes))

    xres_new_p, pooled = pl.pallas_call(
        functools.partial(_scatter_mlp_kernel, eps, exact_scatter, scatter_dtype),
        grid=(n_tiles,),
        in_specs=[
            pl.BlockSpec((1, TN), lambda i: (0, i)),   # batch ids (row layout)
            pl.BlockSpec((TN, W), lambda i: (i, 0)),   # x node tile
            _full((B_pad, W)),                         # x_res
            _full((W, W)),                             # w_pre
            _full((1, W)),                             # b_pre
            _full((W, W)),                             # group-avg matrix
            _full((W, S_out)),                         # w_gate
            _full((W, S_out)),                         # w_value
            _full((S_out, W)),                         # w_post
            _full((1, W)),                             # b_post
            _full((1, W)),                             # exp(scale)
        ],
        out_specs=(_full((B_pad, W)), _full((B_pad, W))),
        out_shape=(jax.ShapeDtypeStruct((B_pad, W), jnp.float32),
                   jax.ShapeDtypeStruct((B_pad, W), jnp.float32)),
        compiler_params=pltpu.CompilerParams(
            dimension_semantics=("arbitrary",)),       # reduction axis
        cost_estimate=cost1,
    )(batch_row, x_p, xres_p,
      params["w_pre"], params["b_pre"], m_avg,
      params["w_gate"], params["w_value"],
      params["w_post"], params["b_post"], scale_exp)

    # Block-diagonal packed pooled message (tiny [KB, pack*W] XLA op).
    pooled_blk = jnp.kron(jnp.eye(pack, dtype=jnp.float32), pooled)

    # ---- phase 2: gather pooled message back to packed node rows (parallel) -
    cost2 = pl.CostEstimate(
        flops=int(2 * R_pad * KB * pack * W),
        transcendentals=0,
        bytes_accessed=int(4 * (R_pad * KB + KB * pack * W + N_pad * W)))

    out_packed = pl.pallas_call(
        _gather_kernel,
        grid=(n_tiles,),
        in_specs=[
            pl.BlockSpec((TR, KB), lambda i: (i, 0)),  # one-hot condition plane
            _full((KB, pack * W)),                     # block-diag pooled message
        ],
        out_specs=pl.BlockSpec((TR, pack * W), lambda i: (i, 0)),
        out_shape=jax.ShapeDtypeStruct((R_pad, pack * W), jnp.float32),
        compiler_params=pltpu.CompilerParams(
            dimension_semantics=("parallel",)),        # megacore sharding
        cost_estimate=cost2,
    )(bid_minus, pooled_blk)

    # Row-major [R_pad, pack*W] == [N_pad, W]: reshape is free.
    out_nodes = out_packed.reshape(N_pad, W)[:N]
    return out_nodes, xres_new_p[:B]


# ----------------------------------------------------------------------------
# Parameters (Conv1d(k=1) weights stored pre-transposed [in, out]).
# ----------------------------------------------------------------------------
def make_params(key, width, num_head, width_scale, scale_init=0.01):
    W, H, S = width, num_head, width_scale
    Wg = W // H
    Og = Wg * S
    ks = jax.random.split(key, 6)

    def grouped_dense(k):
        # TODO(synk): keep block-diagonal dense only while Wg < 128; switch to
        # per-group [Wg, Og] matmuls at production widths.
        blocks = jax.random.normal(k, (H, Wg, Og), dtype=jnp.float32) * 0.1
        full = jnp.zeros((W, W * S), dtype=jnp.float32)
        for g in range(H):
            full = full.at[g * Wg:(g + 1) * Wg, g * Og:(g + 1) * Og].set(blocks[g])
        return full

    return {
        "w_pre": jax.random.normal(ks[0], (W, W), dtype=jnp.float32) * 0.1,
        "b_pre": jax.random.normal(ks[1], (1, W), dtype=jnp.float32) * 0.1,
        "w_gate": grouped_dense(ks[2]),
        "w_value": grouped_dense(ks[3]),
        "w_post": jax.random.normal(ks[4], (W * S, W), dtype=jnp.float32) * 0.1,
        "b_post": jax.random.normal(ks[5], (1, W), dtype=jnp.float32) * 0.1,
        "log_scale": jnp.full((1, W), math.log(scale_init), dtype=jnp.float32),
    }


def virt_message_ref(x, x_res, batch, params, num_head, eps=1e-5,
                     scatter_dtype=None):
    """Plain-JAX reference. If scatter_dtype is given, x is rounded to it before
    the segment-sum (matches the kernel's bf16 fast-path scatter)."""
    B, W = x_res.shape
    xs = x if scatter_dtype is None else x.astype(scatter_dtype).astype(jnp.float32)
    xx = jax.ops.segment_sum(xs, batch, num_segments=B) + x_res
    x_res_new = xx
    y = xx @ params["w_pre"] + params["b_pre"]
    G = num_head
    yg = y.reshape(B, G, W // G)
    mean = yg.mean(-1, keepdims=True)
    var = ((yg - mean) ** 2).mean(-1, keepdims=True)
    y_n = ((yg - mean) / jnp.sqrt(var + eps)).reshape(B, W)
    gate = jnp.maximum(y_n @ params["w_gate"], 0.0)
    val = y_n @ params["w_value"]
    out = (gate * val) @ params["w_post"] + params["b_post"]
    out = jnp.exp(params["log_scale"]) * out
    return out[batch], x_res_new


def _check_exact(x, x_res, batch, params, num_head, tile_n):
    out_nodes, out_res = virt_message(x, x_res, batch, params, num_head,
                                      tile_n=tile_n)
    jax.block_until_ready((out_nodes, out_res))
    ref_nodes, ref_res = virt_message_ref(x, x_res, batch, params, num_head)
    assert out_nodes.shape == ref_nodes.shape and out_res.shape == ref_res.shape
    assert jnp.allclose(out_res, ref_res, rtol=1e-3, atol=1e-3)
    assert jnp.allclose(out_nodes, ref_nodes, rtol=1e-3, atol=1e-3)


def _check_bf16(x, x_res, batch, params, num_head, tile_n):
    out_nodes, out_res = virt_message(x, x_res, batch, params, num_head,
                                      tile_n=tile_n, scatter_dtype=jnp.bfloat16)
    jax.block_until_ready((out_nodes, out_res))
    ref_nodes, ref_res = virt_message_ref(x, x_res, batch, params, num_head,
                                          scatter_dtype=jnp.bfloat16)
    assert jnp.allclose(out_res, ref_res, rtol=1e-3, atol=1e-3)
    assert jnp.allclose(out_nodes, ref_nodes, rtol=1e-3, atol=1e-3)


if __name__ == "__main__":
    WIDTH, NUM_HEAD, WIDTH_SCALE = 32, 4, 2
    key = jax.random.PRNGKey(0)
    k_x, k_res, k_p, k_x2, k_res2 = jax.random.split(key, 5)
    params = make_params(k_p, WIDTH, NUM_HEAD, WIDTH_SCALE, scale_init=0.01)

    # Test 1: small shapes (single tile): N=16 nodes, B=4 graphs.
    N1, B1 = 16, 4
    x1 = jax.random.normal(k_x, (N1, WIDTH), dtype=jnp.float32)
    xres1 = jax.random.normal(k_res, (B1, WIDTH), dtype=jnp.float32)
    batch1 = jnp.repeat(jnp.arange(B1, dtype=jnp.int32), N1 // B1)
    _check_exact(x1, xres1, batch1, params, NUM_HEAD, tile_n=512)

    # Test 2: multi-tile grid with padding: N=1000 nodes, B=5 graphs.
    N2, B2 = 1000, 5
    x2 = jax.random.normal(k_x2, (N2, WIDTH), dtype=jnp.float32)
    xres2 = jax.random.normal(k_res2, (B2, WIDTH), dtype=jnp.float32)
    batch2 = jnp.minimum(jnp.arange(N2, dtype=jnp.int32) // (N2 // B2), B2 - 1)
    _check_exact(x2, xres2, batch2, params, NUM_HEAD, tile_n=512)

    # Also exercise the bf16 fast-path scatter on the multi-tile case.
    _check_bf16(x2, xres2, batch2, params, NUM_HEAD, tile_n=512)

    print("KERNEL_OK")
</pallas_src>

<mosaic_0001>
module attributes {stable_mosaic.version = 11 : i64} {
  func.func @_scatter_mlp_kernel(%arg0: i32, %arg1: memref<1x128xi32, #tpu.memory_space<vmem>>, %arg2: memref<128x32xf32, #tpu.memory_space<vmem>>, %arg3: memref<8x32xf32, #tpu.memory_space<vmem>>, %arg4: memref<32x32xf32, #tpu.memory_space<vmem>>, %arg5: memref<1x32xf32, #tpu.memory_space<vmem>>, %arg6: memref<32x32xf32, #tpu.memory_space<vmem>>, %arg7: memref<32x64xf32, #tpu.memory_space<vmem>>, %arg8: memref<32x64xf32, #tpu.memory_space<vmem>>, %arg9: memref<64x32xf32, #tpu.memory_space<vmem>>, %arg10: memref<1x32xf32, #tpu.memory_space<vmem>>, %arg11: memref<1x32xf32, #tpu.memory_space<vmem>>, %arg12: memref<8x32xf32, #tpu.memory_space<vmem>>, %arg13: memref<8x32xf32, #tpu.memory_space<vmem>>) attributes {dimension_semantics = [#tpu.dimension_semantics<arbitrary>], iteration_bounds = array<i64: 1>, scalar_prefetch = 0 : i64, scratch_operands = 0 : i64, tpu.core_type = #tpu.core_type<tc>, window_params = [{transform_indices = @transform_0, window_bounds = array<i64: 1, 128>}, {transform_indices = @transform_1, window_bounds = array<i64: 128, 32>}, {pipeline_mode = #tpu.pipeline_mode<synchronous>, transform_indices = @transform_2, window_bounds = array<i64: 8, 32>}, {pipeline_mode = #tpu.pipeline_mode<synchronous>, transform_indices = @transform_3, window_bounds = array<i64: 32, 32>}, {pipeline_mode = #tpu.pipeline_mode<synchronous>, transform_indices = @transform_4, window_bounds = array<i64: 1, 32>}, {pipeline_mode = #tpu.pipeline_mode<synchronous>, transform_indices = @transform_5, window_bounds = array<i64: 32, 32>}, {pipeline_mode = #tpu.pipeline_mode<synchronous>, transform_indices = @transform_6, window_bounds = array<i64: 32, 64>}, {pipeline_mode = #tpu.pipeline_mode<synchronous>, transform_indices = @transform_7, window_bounds = array<i64: 32, 64>}, {pipeline_mode = #tpu.pipeline_mode<synchronous>, transform_indices = @transform_8, window_bounds = array<i64: 64, 32>}, {pipeline_mode = #tpu.pipeline_mode<synchronous>, transform_indices = @transform_9, window_bounds = array<i64: 1, 32>}, {pipeline_mode = #tpu.pipeline_mode<synchronous>, transform_indices = @transform_10, window_bounds = array<i64: 1, 32>}, {pipeline_mode = #tpu.pipeline_mode<synchronous>, transform_indices = @transform_11, window_bounds = array<i64: 8, 32>}, {pipeline_mode = #tpu.pipeline_mode<synchronous>, transform_indices = @transform_12, window_bounds = array<i64: 8, 32>}]} {
    %c0_i32 = arith.constant 0 : i32
    %0 = arith.cmpi eq, %arg0, %c0_i32 : i32
    %1 = arith.extui %0 : i1 to i32
    %c0_i32_0 = arith.constant 0 : i32
    %2 = arith.cmpi ne, %1, %c0_i32_0 : i32
    scf.if %2 {
      %c0_10 = arith.constant 0 : index
      %c0_11 = arith.constant 0 : index
      %17 = vector.load %arg3[%c0_10, %c0_11] : memref<8x32xf32, #tpu.memory_space<vmem>>, vector<8x32xf32>
      %c0_12 = arith.constant 0 : index
      %c0_13 = arith.constant 0 : index
      %18 = vector.load %arg12[%c0_12, %c0_13] : memref<8x32xf32, #tpu.memory_space<vmem>>, vector<8x32xf32>
      tpu.vector_store %arg12[%c0_12, %c0_13], %17 {strides = array<i32>} : memref<8x32xf32, #tpu.memory_space<vmem>>, vector<8x32xf32>,
    } else {
    }
    %c0 = arith.constant 0 : index
    %c0_1 = arith.constant 0 : index
    %3 = vector.load %arg1[%c0, %c0_1] : memref<1x128xi32, #tpu.memory_space<vmem>>, vector<1x128xi32>
    %4 = tpu.iota {dimensions = array<i32: 0>} : vector<8x128xi32>
    %5 = vector.broadcast %3 : vector<1x128xi32> to vector<8x128xi32>
    %6 = arith.cmpi eq, %5, %4 : vector<8x128xi32>
    %c0_2 = arith.constant 0 : index
    %c0_3 = arith.constant 0 : index
    %7 = vector.load %arg12[%c0_2, %c0_3] : memref<8x32xf32, #tpu.memory_space<vmem>>, vector<8x32xf32>
    %8 = arith.extui %6 : vector<8x128xi1> to vector<8x128xi32>
    %9 = arith.sitofp %8 : vector<8x128xi32> to vector<8x128xf32>
    %c0_4 = arith.constant 0 : index
    %c0_5 = arith.constant 0 : index
    %10 = vector.load %arg2[%c0_4, %c0_5] : memref<128x32xf32, #tpu.memory_space<vmem>>, vector<128x32xf32>
    %cst = arith.constant dense<0.000000e+00> : vector<8x32xf32>
    %11 = tpu.matmul %9, %10, %cst {dimension_numbers = #tpu.dot_dimension_numbers<[1], [0], [0], [1], [0, 0, 1, 1], [], []>, precision = #tpu.contract_precision<fp32>} : vector<8x128xf32>, vector<128x32xf32>, vector<8x32xf32> -> vector<8x32xf32>
    %12 = arith.addf %7, %11 : vector<8x32xf32>
    %c0_6 = arith.constant 0 : index
    %c0_7 = arith.constant 0 : index
    %13 = vector.load %arg12[%c0_6, %c0_7] : memref<8x32xf32, #tpu.memory_space<vmem>>, vector<8x32xf32>
    tpu.vector_store %arg12[%c0_6, %c0_7], %12 {strides = array<i32>} : memref<8x32xf32, #tpu.memory_space<vmem>>, vector<8x32xf32>,
    %c0_i32_8 = arith.constant 0 : i32
    %14 = arith.cmpi eq, %arg0, %c0_i32_8 : i32
    %15 = arith.extui %14 : i1 to i32
    %c0_i32_9 = arith.constant 0 : i32
    %16 = arith.cmpi ne, %15, %c0_i32_9 : i32
    scf.if %16 {
      %c0_10 = arith.constant 0 : index
      %c0_11 = arith.constant 0 : index
      %17 = vector.load %arg12[%c0_10, %c0_11] : memref<8x32xf32, #tpu.memory_space<vmem>>, vector<8x32xf32>
      %c0_12 = arith.constant 0 : index
      %c0_13 = arith.constant 0 : index
      %18 = vector.load %arg4[%c0_12, %c0_13] : memref<32x32xf32, #tpu.memory_space<vmem>>, vector<32x32xf32>
      %cst_14 = arith.constant dense<0.000000e+00> : vector<8x32xf32>
      %19 = tpu.matmul %17, %18, %cst_14 {dimension_numbers = #tpu.dot_dimension_numbers<[1], [0], [0], [1], [0, 0, 1, 1], [], []>} : vector<8x32xf32>, vector<32x32xf32>, vector<8x32xf32> -> vector<8x32xf32>
      %c0_15 = arith.constant 0 : index
      %c0_16 = arith.constant 0 : index
      %20 = vector.load %arg5[%c0_15, %c0_16] : memref<1x32xf32, #tpu.memory_space<vmem>>, vector<1x32xf32>
      %21 = vector.broadcast %20 : vector<1x32xf32> to vector<8x32xf32>
      %22 = arith.addf %19, %21 : vector<8x32xf32>
      %c0_17 = arith.constant 0 : index
      %c0_18 = arith.constant 0 : index
      %23 = vector.load %arg6[%c0_17, %c0_18] : memref<32x32xf32, #tpu.memory_space<vmem>>, vector<32x32xf32>
      %cst_19 = arith.constant dense<0.000000e+00> : vector<8x32xf32>
      %24 = tpu.matmul %22, %23, %cst_19 {dimension_numbers = #tpu.dot_dimension_numbers<[1], [0], [0], [1], [0, 0, 1, 1], [], []>} : vector<8x32xf32>, vector<32x32xf32>, vector<8x32xf32> -> vector<8x32xf32>
      %25 = arith.subf %22, %24 : vector<8x32xf32>
      %26 = arith.mulf %25, %25 : vector<8x32xf32>
      %c0_20 = arith.constant 0 : index
      %c0_21 = arith.constant 0 : index
      %27 = vector.load %arg6[%c0_20, %c0_21] : memref<32x32xf32, #tpu.memory_space<vmem>>, vector<32x32xf32>
      %cst_22 = arith.constant dense<0.000000e+00> : vector<8x32xf32>
      %28 = tpu.matmul %26, %27, %cst_22 {dimension_numbers = #tpu.dot_dimension_numbers<[1], [0], [0], [1], [0, 0, 1, 1], [], []>} : vector<8x32xf32>, vector<32x32xf32>, vector<8x32xf32> -> vector<8x32xf32>
      %cst_23 = arith.constant 9.99999974E-6 : f32
      %29 = vector.broadcast %cst_23 : f32 to vector<8x32xf32>
      %30 = arith.addf %28, %29 : vector<8x32xf32>
      %31 = math.rsqrt %30 : vector<8x32xf32>
      %32 = arith.mulf %25, %31 : vector<8x32xf32>
      %c0_24 = arith.constant 0 : index
      %c0_25 = arith.constant 0 : index
      %33 = vector.load %arg7[%c0_24, %c0_25] : memref<32x64xf32, #tpu.memory_space<vmem>>, vector<32x64xf32>
      %cst_26 = arith.constant dense<0.000000e+00> : vector<8x64xf32>
      %34 = tpu.matmul %32, %33, %cst_26 {dimension_numbers = #tpu.dot_dimension_numbers<[1], [0], [0], [1], [0, 0, 1, 1], [], []>} : vector<8x32xf32>, vector<32x64xf32>, vector<8x64xf32> -> vector<8x64xf32>
      %cst_27 = arith.constant 0.000000e+00 : f32
      %35 = vector.broadcast %cst_27 : f32 to vector<8x64xf32>
      %36 = arith.maximumf %34, %35 : vector<8x64xf32>
      %c0_28 = arith.constant 0 : index
      %c0_29 = arith.constant 0 : index
      %37 = vector.load %arg8[%c0_28, %c0_29] : memref<32x64xf32, #tpu.memory_space<vmem>>, vector<32x64xf32>
      %cst_30 = arith.constant dense<0.000000e+00> : vector<8x64xf32>
      %38 = tpu.matmul %32, %37, %cst_30 {dimension_numbers = #tpu.dot_dimension_numbers<[1], [0], [0], [1], [0, 0, 1, 1], [], []>} : vector<8x32xf32>, vector<32x64xf32>, vector<8x64xf32> -> vector<8x64xf32>
      %39 = arith.mulf %36, %38 : vector<8x64xf32>
      %c0_31 = arith.constant 0 : index
      %c0_32 = arith.constant 0 : index
      %40 = vector.load %arg9[%c0_31, %c0_32] : memref<64x32xf32, #tpu.memory_space<vmem>>, vector<64x32xf32>
      %cst_33 = arith.constant dense<0.000000e+00> : vector<8x32xf32>
      %41 = tpu.matmul %39, %40, %cst_33 {dimension_numbers = #tpu.dot_dimension_numbers<[1], [0], [0], [1], [0, 0, 1, 1], [], []>} : vector<8x64xf32>, vector<64x32xf32>, vector<8x32xf32> -> vector<8x32xf32>
      %c0_34 = arith.constant 0 : index
      %c0_35 = arith.constant 0 : index
      %42 = vector.load %arg10[%c0_34, %c0_35] : memref<1x32xf32, #tpu.memory_space<vmem>>, vector<1x32xf32>
      %43 = vector.broadcast %42 : vector<1x32xf32> to vector<8x32xf32>
      %44 = arith.addf %41, %43 : vector<8x32xf32>
      %c0_36 = arith.constant 0 : index
      %c0_37 = arith.constant 0 : index
      %45 = vector.load %arg11[%c0_36, %c0_37] : memref<1x32xf32, #tpu.memory_space<vmem>>, vector<1x32xf32>
      %46 = vector.broadcast %45 : vector<1x32xf32> to vector<8x32xf32>
      %47 = arith.mulf %46, %44 : vector<8x32xf32>
      %c0_38 = arith.constant 0 : index
      %c0_39 = arith.constant 0 : index
      %48 = vector.load %arg13[%c0_38, %c0_39] : memref<8x32xf32, #tpu.memory_space<vmem>>, vector<8x32xf32>
      tpu.vector_store %arg13[%c0_38, %c0_39], %47 {strides = array<i32>} : memref<8x32xf32, #tpu.memory_space<vmem>>, vector<8x32xf32>,
    } else {
    }
    return
  }
  func.func @transform_0(%arg0: i32) -> (i32, i32) {
    %c0_i32 = arith.constant 0 : i32
    %c0_i32_0 = arith.constant 0 : i32
    return %c0_i32, %arg0 : i32, i32
  }
  func.func @transform_1(%arg0: i32) -> (i32, i32) {
    %c0_i32 = arith.constant 0 : i32
    %c0_i32_0 = arith.constant 0 : i32
    return %arg0, %c0_i32 : i32, i32
  }
  func.func @transform_2(%arg0: i32) -> (i32, i32) {
    %c0_i32 = arith.constant 0 : i32
    %c0_i32_0 = arith.constant 0 : i32
    %c0_i32_1 = arith.constant 0 : i32
    return %c0_i32, %c0_i32_0 : i32, i32
  }
  func.func @transform_3(%arg0: i32) -> (i32, i32) {
    %c0_i32 = arith.constant 0 : i32
    %c0_i32_0 = arith.constant 0 : i32
    %c0_i32_1 = arith.constant 0 : i32
    return %c0_i32, %c0_i32_0 : i32, i32
  }
  func.func @transform_4(%arg0: i32) -> (i32, i32) {
    %c0_i32 = arith.constant 0 : i32
    %c0_i32_0 = arith.constant 0 : i32
    %c0_i32_1 = arith.constant 0 : i32
    return %c0_i32, %c0_i32_0 : i32, i32
  }
  func.func @transform_5(%arg0: i32) -> (i32, i32) {
    %c0_i32 = arith.constant 0 : i32
    %c0_i32_0 = arith.constant 0 : i32
    %c0_i32_1 = arith.constant 0 : i32
    return %c0_i32, %c0_i32_0 : i32, i32
  }
  func.func @transform_6(%arg0: i32) -> (i32, i32) {
    %c0_i32 = arith.constant 0 : i32
    %c0_i32_0 = arith.constant 0 : i32
    %c0_i32_1 = arith.constant 0 : i32
    return %c0_i32, %c0_i32_0 : i32, i32
  }
  func.func @transform_7(%arg0: i32) -> (i32, i32) {
    %c0_i32 = arith.constant 0 : i32
    %c0_i32_0 = arith.constant 0 : i32
    %c0_i32_1 = arith.constant 0 : i32
    return %c0_i32, %c0_i32_0 : i32, i32
  }
  func.func @transform_8(%arg0: i32) -> (i32, i32) {
    %c0_i32 = arith.constant 0 : i32
    %c0_i32_0 = arith.constant 0 : i32
    %c0_i32_1 = arith.constant 0 : i32
    return %c0_i32, %c0_i32_0 : i32, i32
  }
  func.func @transform_9(%arg0: i32) -> (i32, i32) {
    %c0_i32 = arith.constant 0 : i32
    %c0_i32_0 = arith.constant 0 : i32
    %c0_i32_1 = arith.constant 0 : i32
    return %c0_i32, %c0_i32_0 : i32, i32
  }
  func.func @transform_10(%arg0: i32) -> (i32, i32) {
    %c0_i32 = arith.constant 0 : i32
    %c0_i32_0 = arith.constant 0 : i32
    %c0_i32_1 = arith.constant 0 : i32
    return %c0_i32, %c0_i32_0 : i32, i32
  }
  func.func @transform_11(%arg0: i32) -> (i32, i32) {
    %c0_i32 = arith.constant 0 : i32
    %c0_i32_0 = arith.constant 0 : i32
    %c0_i32_1 = arith.constant 0 : i32
    return %c0_i32, %c0_i32_0 : i32, i32
  }
  func.func @transform_12(%arg0: i32) -> (i32, i32) {
    %c0_i32 = arith.constant 0 : i32
    %c0_i32_0 = arith.constant 0 : i32
    %c0_i32_1 = arith.constant 0 : i32
    return %c0_i32, %c0_i32_0 : i32, i32
  }
}

</mosaic_0001>

<bundles_post_ra>
// kernel: tpu_custom_call.1
= control target key start
LH: loop header
LB: loop body
LE: loop exit
PB: predicated region body
PF: predicated region fallthrough
CT: control target
= control target key end

     0   :  { %18 = vsyncpa [#allocation3], 0  ;;  %v1726_v3 = vmov 0.0   ;;  %vm1727_vm0 = vmmov 0   ;;  %s2364_s0 = inlined_call_operand.vmem [shape: s32[1,128], index: 0, kind: input, shape index: {}]   ;;  %s2365_s1 = inlined_call_operand.vmem [shape: f32[128,32], index: 1, kind: input, shape index: {}]   ;;  %s2366_s2 = inlined_call_operand.vmem [shape: f32[8,32], index: 2, kind: input, shape index: {}]   ;;  %s2367_s3 = inlined_call_operand.vmem [shape: f32[32,32], index: 3, kind: input, shape index: {}]   ;;  %s2368_s4 = inlined_call_operand.vmem [shape: f32[1,32], index: 4, kind: input, shape index: {}]   ;;  %s2369_s5 = inlined_call_operand.vmem [shape: f32[32,32], index: 5, kind: input, shape index: {}]   ;;  %s2370_s6 = inlined_call_operand.vmem [shape: f32[32,64], index: 6, kind: input, shape index: {}]   ;;  %s2371_s7 = inlined_call_operand.vmem [shape: f32[32,64], index: 7, kind: input, shape index: {}]   ;;  %s2372_s8 = inlined_call_operand.vmem [shape: f32[64,32], index: 8, kind: input, shape index: {}]   ;;  %s2373_s9 = inlined_call_operand.vmem [shape: f32[1,32], index: 9, kind: input, shape index: {}]   ;;  %s2374_s10 = inlined_call_operand.vmem [shape: f32[1,32], index: 10, kind: input, shape index: {}]   ;;  %s2375_s11 = inlined_call_operand.hbm [shape: f32[8,32], index: 11, kind: output, shape index: {0}]   ;;  %s2376_s12 = inlined_call_operand.hbm [shape: f32[8,32], index: 12, kind: output, shape index: {1}]  }
   0x1   :  { %v75_v0 = vld [vmem:[%s2365_s1 + $0x78] sm:$0xff]  ;;  %v74_v1 = vld [vmem:[%s2365_s1 + $0x70] sm:$0xff]  ;;  %v73_v2 = vld [vmem:[%s2365_s1 + $0x68] sm:$0xff]  ;;  %1391 = vmatprep.subr.mxu0 %v1726_v3  ;;  %1426 = vmatprep.subr.mxu1 %v1726_v3 }
   0x2   :  { %v1806_v4 = vand.u32 4294901760, %v75_v0  ;;  %v1808_v5 = vand.u32 4294901760, %v74_v1  ;;  %v1810_v6 = vand.u32 4294901760, %v73_v2  ;;  %v72_v7 = vld [vmem:[%s2365_s1 + $0x60] sm:$0xff]  ;;  %v71_v8 = vld [vmem:[%s2365_s1 + $0x58] sm:$0xff]  ;;  %v70_v9 = vld [vmem:[%s2365_s1 + $0x50] sm:$0xff]  ;;  %1423 = vmatprep.mubr.msk.f32.mxu0 %vm1727_vm0, %v1726_v3  ;;  %1458 = vmatprep.mubr.msk.f32.mxu1 %vm1727_vm0, %v1726_v3 }
   0x3   :  { %v1822_v10 = vand.u32 4294901760, %v72_v7  ;;  %v1824_v11 = vand.u32 4294901760, %v71_v8  ;;  %v1826_v12 = vand.u32 4294901760, %v70_v9  ;;  %v69_v13 = vld [vmem:[%s2365_s1 + $0x48] sm:$0xff]  ;;  %v68_v14 = vld [vmem:[%s2365_s1 + $0x40] sm:$0xff]  ;;  %v67_v19 = vld [vmem:[%s2365_s1 + $0x38] sm:$0xff] }
   0x4   :  { %1392 = vmatpush3.msra.mxu0 %v1806_v4  ;;  %v1840_v15 = vsub.f32 %v75_v0, %v1806_v4  ;;  %v1843_v16 = vsub.f32 %v74_v1, %v1808_v5  ;;  %v1845_v17 = vand.u32 4294901760, %v69_v13  ;;  %v1848_v18 = vsub.f32 %v73_v2, %v1810_v6  ;;  %v66_v29 = vld [vmem:[%s2365_s1 + $0x30] sm:$0xff]  ;;  %v65_v34 = vld [vmem:[%s2365_s1 + $0x28] sm:$0xff] }
   0x5   :  { %1393 = vmatprep.subr.mxu0 %v1726_v3  ;;  %v1855_v20 = vsub.f32 %v72_v7, %v1822_v10  ;;  %v1858_v21 = vsub.f32 %v71_v8, %v1824_v11  ;;  %v1864_v25 = vand.u32 4294901760, %v68_v14  ;;  %v1868_v27 = vand.u32 4294901760, %v67_v19 }
   0x6   :  { %1394 = vmatpush3.msra.mxu0 %v1808_v5  ;;  %v170_v22 = vand.u32 4294901760, %v1840_v15  ;;  %v177_v23 = vand.u32 4294901760, %v1843_v16  ;;  %v184_v24 = vand.u32 4294901760, %v1848_v18  ;;  %v1875_v30 = vsub.f32 %v70_v9, %v1826_v12 }
   0x7   :  { %1395 = vmatprep.subr.mxu0 %v1726_v3  ;;  %v191_v26 = vand.u32 4294901760, %v1855_v20  ;;  %v198_v28 = vand.u32 4294901760, %v1858_v21  ;;  %v1891_v35 = vsub.f32 %v69_v13, %v1845_v17 }
   0x8   :  { %1396 = vmatpush3.msra.mxu0 %v1810_v6  ;;  %v171_v31 = vsub.f32 %v1840_v15, %v170_v22  ;;  %v178_v32 = vsub.f32 %v1843_v16, %v177_v23  ;;  %v185_v33 = vsub.f32 %v1848_v18, %v184_v24 }
   0x9   :  { %19 = vsyncpa [#allocation5], 0  ;;  %1397 = vmatprep.subr.mxu0 %v1726_v3  ;;  %v205_v36 = vand.u32 4294901760, %v1875_v30  ;;  %v192_v39 = vsub.f32 %v1855_v20, %v191_v26  ;;  %v1899_v40 = vand.u32 4294901760, %v66_v29  ;;  %v1902_v41 = vand.u32 4294901760, %v65_v34  ;;  %v64_v42 = vld [vmem:[%s2365_s1 + $0x20] sm:$0xff] }
   0xa   :  { %1398 = vmatpush3.msra.mxu0 %v1822_v10  ;;  %v172_v37 = vand.u32 4294901760, %v171_v31  ;;  %v179_v38 = vand.u32 4294901760, %v178_v32  ;;  %v1908_v43 = vsub.f32 %v68_v14, %v1864_v25  ;;  %v50_v44 = vlaneseq  ;;  %v63_v50 = vld [vmem:[%s2365_s1 + $0x18] sm:$0xff]  ;;  %v62_v54 = vld [vmem:[%s2365_s1 + $0x10] sm:$0xff]  ;;  %v1939_v56 = vld [vmem:[%s2364_s0] ss:$0 sm:$0xff] }
   0xb   :  { %1399 = vmatprep.subr.mxu0 %v1726_v3  ;;  %v186_v45 = vand.u32 4294901760, %v185_v33  ;;  %v199_v46 = vsub.f32 %v1858_v21, %v198_v28  ;;  %v212_v47 = vand.u32 4294901760, %v1891_v35  ;;  %v1916_v48 = vsub.f32 %v67_v19, %v1868_v27  ;;  %v61_v62 = vld [vmem:[%s2365_s1 + $0x8] sm:$0xff]  ;;  %v60_v8 = vld [vmem:[%s2365_s1] sm:$0xff]  ;;  %s1729_s19 = smov [#allocation2]  }
   0xc   :  { %1400 = vmatpush3.msra.mxu0 %v1824_v11  ;;  %1427 = vmatpush3.msra.mxu1 %v172_v37  ;;  %v206_v49 = vsub.f32 %v1875_v30, %v205_v36  ;;  %v193_v51 = vand.u32 4294901760, %v192_v39  ;;  %v1927_v52 = vand.u32 4294901760, %v64_v42  ;;  %v219_v53 = vand.u32 4294901760, %v1908_v43  ;;  %s1219_s20 = sshll.u32 %s1729_s19, 4  ;;  %s1220_s20 = int_to_ptr.vmem [resolvable:$true] %s1219_s20 }
   0xd   :  { %1401 = vmatprep.subr.mxu0 %v1726_v3  ;;  %1428 = vmatprep.subr.mxu1 %v1726_v3  ;;  %v1934_v55 = vsub.f32 %v66_v29, %v1899_v40  ;;  %v226_v57 = vand.u32 4294901760, %v1916_v48  ;;  %v1944_v58 = vshrl.u32 %v50_v44, 7  ;;  %v200_v59 = vand.u32 4294901760, %v199_v46  ;;  %s1682_s21 = scalar_lea.vmem %s1220_s20, 128  ;;  %p1687_p1 = scmp.lt.s32.totalorder %s1220_s20, %s1220_s20 }
   0xe   :  { %1402 = vmatpush3.msra.mxu0 %v1826_v12  ;;  %1429 = vmatpush3.msra.mxu1 %v179_v38  ;;  %v213_v60 = vsub.f32 %v1891_v35, %v212_v47  ;;  %v1950_v61 = vand.u32 4294901760, %v63_v50  ;;  %v1956_v63 = vsub.f32 %v65_v34, %v1902_v41  ;;  %v207_v0 = vand.u32 4294901760, %v206_v49  ;;  %p1683_p0 = scmp.ne.s32.totalorder %s1220_s20, %s1682_s21  ;;  %p1688_p2 = scmp.lt.s32.totalorder %s1682_s21, %s1682_s21 }
   0xf   :  { %1403 = vmatprep.subr.mxu0 %v1726_v3  ;;  %1430 = vmatprep.subr.mxu1 %v1726_v3  ;;  %v1960_v1 = vand.u32 4294901760, %v62_v54  ;;  %vm56_vm1 = vcmp.eq.s32.totalorder %v1939_v56, %v1944_v58  ;;  %v220_v2 = vsub.f32 %v1908_v43, %v219_v53  ;;  %v233_v7 = vand.u32 4294901760, %v1934_v55 }
  0x10   :  { %1404 = vmatpush3.msra.mxu0 %v1845_v17  ;;  %1431 = vmatpush3.msra.mxu1 %v186_v45  ;;  %v1973_v9 = vsub.f32 %v64_v42, %v1927_v52  ;;  %v1242_v13 = vsel %vm56_vm1, 1.0, %v1726_v3  ;;  %v227_v14 = vsub.f32 %v1916_v48, %v226_v57  ;;  %v1984_v19 = vand.u32 4294901760, %v61_v62  ;;  %p1689_p3 = por %p1688_p2, %p1687_p1 }
  0x11   :  { %1405 = vmatprep.subr.mxu0 %v1726_v3  ;;  %1432 = vmatprep.subr.mxu1 %v1726_v3  ;;  %v214_v29 = vand.u32 4294901760, %v213_v60  ;;  %v240_v31 = vand.u32 4294901760, %v1956_v63  ;;  %v1988_v32 = vsub.f32 %v1242_v13, %v1242_v13  ;;  %v1991_v33 = vsub.f32 %v63_v50, %v1950_v61 }
  0x12   :  { %1406 = vmatpush3.msra.mxu0 %v1864_v25  ;;  %1433 = vmatpush3.msra.mxu1 %v193_v51  ;;  %v1995_v34 = vand.u32 4294901760, %v60_v8  ;;  %v221_v37 = vand.u32 4294901760, %v220_v2  ;;  %v234_v38 = vsub.f32 %v1934_v55, %v233_v7  ;;  %v247_v39 = vand.u32 4294901760, %v1973_v9  ;;  %p1690_p4 = pnand %p1689_p3, %p1683_p0 }
  0x13   :  { %1407 = vmatprep.subr.mxu0 %v1726_v3  ;;  %1434 = vmatprep.subr.mxu1 %v1726_v3  ;;  %v2003_v42 = vsub.f32 %v62_v54, %v1960_v1  ;;  %v228_v44 = vand.u32 4294901760, %v227_v14  ;;  %v241_v45 = vsub.f32 %v1956_v63, %v240_v31  ;;  %v159_v46 = vand.u32 4294901760, %v1988_v32 }
  0x14   :  { %1408 = vmatpush3.msra.mxu0 %v1868_v27  ;;  %1435 = vmatpush3.msra.mxu1 %v200_v59  ;;  %v254_v49 = vand.u32 4294901760, %v1991_v33  ;;  %v2014_v50 = vsub.f32 %v61_v62, %v1984_v19  ;;  %v235_v51 = vand.u32 4294901760, %v234_v38  ;;  %v248_v54 = vsub.f32 %v1973_v9, %v247_v39 }
  0x15   :  { %1409 = vmatprep.subr.mxu0 %v1726_v3  ;;  %1436 = vmatprep.subr.mxu1 %v1726_v3  ;;  %v261_v59 = vand.u32 4294901760, %v2003_v42  ;;  %v2024_v60 = vsub.f32 %v60_v8, %v1995_v34  ;;  %v242_v62 = vand.u32 4294901760, %v241_v45  ;;  %vm47_vm2 = vcmask 261120  }
  0x16   :  { %1410 = vmatpush3.msra.mxu0 %v1899_v40  ;;  %1437 = vmatpush3.msra.mxu1 %v207_v0  ;;  %v160_v0 = vsub.f32 %v1988_v32, %v159_v46  ;;  %v255_v2 = vsub.f32 %v1991_v33, %v254_v49  ;;  %v268_v13 = vand.u32 4294901760, %v2014_v50  ;;  %v249_v8 = vand.u32 4294901760, %v248_v54 }
  0x17   :  { %1411 = vmatprep.subr.mxu0 %v1726_v3  ;;  %1438 = vmatprep.subr.mxu1 %v1726_v3  ;;  %v262_v14 = vsub.f32 %v2003_v42, %v261_v59  ;;  %vm1130_vm3 = vcmask 523264  }
  0x18   :  { %1412 = vmatpush3.msra.mxu0 %v1902_v41  ;;  %1439 = vmatpush3.msra.mxu1 %v214_v29  ;;  %v275_v29 = vand.u32 4294901760, %v2024_v60  ;;  %v256_v38 = vand.u32 4294901760, %v255_v2  ;;  %v1122_v2 = vld [vmem:[%s2372_s8 + $0x38] sm:$0xff] }
  0x19   :  { %1413 = vmatprep.subr.mxu0 %v1726_v3  ;;  %1440 = vmatprep.subr.mxu1 %v1726_v3  ;;  %v263_v45 = vand.u32 4294901760, %v262_v14  ;;  %v1119_v14 = vld [vmem:[%s2372_s8 + $0x20] sm:$0xff] }
  0x1a   :  { %1414 = vmatpush3.msra.mxu0 %v1927_v52  ;;  %1441 = vmatpush3.msra.mxu1 %v221_v37  ;;  %v161_v37 = vand.u32 4294901760, %v160_v0  ;;  %v1728_v0 = vmov 1.0  }
  0x1b   :  { %1415 = vmatprep.subr.mxu0 %v1726_v3  ;;  %1442 = vmatprep.subr.mxu1 %v1726_v3 }
  0x1c   :  { %1416 = vmatpush3.msra.mxu0 %v1950_v61  ;;  %1443 = vmatpush3.msra.mxu1 %v228_v44  ;;  %v269_v44 = vsub.f32 %v2014_v50, %v268_v13 }
  0x1d   :  { %1417 = vmatprep.subr.mxu0 %v1726_v3  ;;  %1444 = vmatprep.subr.mxu1 %v1726_v3 }
  0x1e   :  { %1418 = vmatpush3.msra.mxu0 %v1960_v1  ;;  %1445 = vmatpush3.msra.mxu1 %v235_v51  ;;  %v276_v51 = vsub.f32 %v2024_v60, %v275_v29  ;;  %v270_v54 = vand.u32 4294901760, %v269_v44  ;;  %v1115_v44 = vld [vmem:[%s2372_s8] sm:$0xff] }
  0x1f   :  { %1419 = vmatprep.subr.mxu0 %v1726_v3  ;;  %1446 = vmatprep.subr.mxu1 %v1726_v3 }
  0x20   :  { %1420 = vmatpush3.msra.mxu0 %v1984_v19  ;;  %1447 = vmatpush3.msra.mxu1 %v242_v62  ;;  %v277_v62 = vand.u32 4294901760, %v276_v51 }
  0x21   :  { %1421 = vmatprep.subr.mxu0 %v1726_v3  ;;  %1448 = vmatprep.subr.mxu1 %v1726_v3 }
  0x22   :  { %1422 = vmatpush3.msra.mxu0 %v1995_v34  ;;  %1449 = vmatpush3.msra.mxu1 %v249_v8  ;;  %v1120_v8 = vld [vmem:[%s2372_s8 + $0x28] sm:$0xff] }
  0x23   :  { %1450 = vmatprep.subr.mxu1 %v1726_v3  ;;  %1461 = vmatprep.subr.mxu0 %v1726_v3 }
  0x24   :  { %1424 = vmatmul.mubr.f32.vlgmr.msra.gmra.mxu0 %v161_v37  ;;  %1451 = vmatpush3.msra.mxu1 %v256_v38  ;;  %v1117_v37 = vld [vmem:[%s2372_s8 + $0x10] sm:$0xff]  ;;  %v1116_v38 = vld [vmem:[%s2372_s8 + $0x8] sm:$0xff] }
  0x25   :  { %1462 = vmatpush3.msra.mxu0 %v1840_v15  ;;  %1452 = vmatprep.subr.mxu1 %v1726_v3  ;;  %v810_v15 = vld [vmem:[%s2369_s5 + $0x10] sm:$0xff] }
  0x26   :  { %1463 = vmatprep.subr.mxu0 %v1726_v3  ;;  %1453 = vmatpush3.msra.mxu1 %v263_v45 }
  0x27   :  { %1464 = vmatpush3.msra.mxu0 %v1843_v16  ;;  %1454 = vmatprep.subr.mxu1 %v1726_v3 }
  0x28   :  { %1465 = vmatprep.subr.mxu0 %v1726_v3  ;;  %1455 = vmatpush3.msra.mxu1 %v270_v54 }
  0x29   :  { %1466 = vmatpush3.msra.mxu0 %v1848_v18  ;;  %1456 = vmatprep.subr.mxu1 %v1726_v3 }
  0x2a   :  { %1467 = vmatprep.subr.mxu0 %v1726_v3  ;;  %1457 = vmatpush3.msra.mxu1 %v277_v62 }
  0x2b   :  { %1468 = vmatpush3.msra.mxu0 %v1855_v20  ;;  %1459 = vmatmul.mubr.msk.f32.vlgmr.msra.gmra.mxu1 %vm56_vm1, %v1728_v0 }
  0x2c   :  { %1469 = vmatprep.subr.mxu0 %v1726_v3  ;;  %1496 = vmatprep.subr.mxu1 %v1726_v3 }
  0x2d   :  { %1470 = vmatpush3.msra.mxu0 %v1858_v21  ;;  %1497 = vmatpush3.msra.mxu1 %v1806_v4 }
  0x2e   :  { %1471 = vmatprep.subr.mxu0 %v1726_v3  ;;  %1498 = vmatprep.subr.mxu1 %v1726_v3 }
  0x2f   :  { %1472 = vmatpush3.msra.mxu0 %v1875_v30  ;;  %1499 = vmatpush3.msra.mxu1 %v1808_v5 }
  0x30   :  { %1473 = vmatprep.subr.mxu0 %v1726_v3  ;;  %1500 = vmatprep.subr.mxu1 %v1726_v3 }
  0x31   :  { %1474 = vmatpush3.msra.mxu0 %v1891_v35  ;;  %1501 = vmatpush3.msra.mxu1 %v1810_v6 }
  0x32   :  { %1475 = vmatprep.subr.mxu0 %v1726_v3  ;;  %1502 = vmatprep.subr.mxu1 %v1726_v3 }
  0x33   :  { %1476 = vmatpush3.msra.mxu0 %v1908_v43  ;;  %1503 = vmatpush3.msra.mxu1 %v1822_v10 }
  0x34   :  { %1477 = vmatprep.subr.mxu0 %v1726_v3  ;;  %1504 = vmatprep.subr.mxu1 %v1726_v3 }
  0x35   :  { %1478 = vmatpush3.msra.mxu0 %v1916_v48  ;;  %1505 = vmatpush3.msra.mxu1 %v1824_v11 }
  0x36   :  { %1479 = vmatprep.subr.mxu0 %v1726_v3  ;;  %1506 = vmatprep.subr.mxu1 %v1726_v3 }
  0x37   :  { %1480 = vmatpush3.msra.mxu0 %v1934_v55  ;;  %1507 = vmatpush3.msra.mxu1 %v1826_v12  ;;  %v1246_v55 = vld [vmem:[%s2368_s4] ss:$0 sm:$0xff] }
  0x38   :  { %1481 = vmatprep.subr.mxu0 %v1726_v3  ;;  %1508 = vmatprep.subr.mxu1 %v1726_v3 }
  0x39   :  { %1482 = vmatpush3.msra.mxu0 %v1956_v63  ;;  %1509 = vmatpush3.msra.mxu1 %v1845_v17 }
  0x3a   :  { %1483 = vmatprep.subr.mxu0 %v1726_v3  ;;  %1510 = vmatprep.subr.mxu1 %v1726_v3 }
  0x3b   :  { %1484 = vmatpush3.msra.mxu0 %v1973_v9  ;;  %1511 = vmatpush3.msra.mxu1 %v1864_v25  ;;  %v965_v9 = vld [vmem:[%s2370_s6 + $0x18] sm:$0xff] }
  0x3c   :  { %1485 = vmatprep.subr.mxu0 %v1726_v3  ;;  %1512 = vmatprep.subr.mxu1 %v1726_v3 }
  0x3d   :  { %1486 = vmatpush3.msra.mxu0 %v1991_v33  ;;  %1513 = vmatpush3.msra.mxu1 %v1868_v27  ;;  %v963_v33 = vld [vmem:[%s2370_s6 + $0x8] sm:$0xff] }
  0x3e   :  { %1487 = vmatprep.subr.mxu0 %v1726_v3  ;;  %1514 = vmatprep.subr.mxu1 %v1726_v3 }
  0x3f   :  { %1488 = vmatpush3.msra.mxu0 %v2003_v42  ;;  %1515 = vmatpush3.msra.mxu1 %v1899_v40  ;;  %v1040_v42 = vld [vmem:[%s2371_s7] sm:$0xff] }
  0x40   :  { %1489 = vmatprep.subr.mxu0 %v1726_v3  ;;  %1516 = vmatprep.subr.mxu1 %v1726_v3 }
  0x41   :  { %1490 = vmatpush3.msra.mxu0 %v2014_v50  ;;  %1517 = vmatpush3.msra.mxu1 %v1902_v41 }
  0x42   :  { %1491 = vmatprep.subr.mxu0 %v1726_v3  ;;  %1518 = vmatprep.subr.mxu1 %v1726_v3 }
  0x43   :  { %1492 = vmatpush3.msra.mxu0 %v2024_v60  ;;  %1493 = vmatprep.mubr.msk.f32.mxu0 %vm1727_vm0, %v1726_v3 }
  0x44   :  { %1519 = vmatpush3.msra.mxu1 %v1927_v52  ;;  %1494 = vmatmul.mubr.f32.vlgmr.msra.gmra.mxu0 %v1988_v32  ;;  %v1042_v32 = vld [vmem:[%s2371_s7 + $0x10] sm:$0xff] }
  0x45   :  { %1520 = vmatprep.subr.mxu1 %v1726_v3  ;;  %1531 = vmatprep.subr.mxu0 %v1726_v3 }
  0x46   :  { %1521 = vmatpush3.msra.mxu1 %v1950_v61  ;;  %1532 = vmatpush3.msra.mxu0 %v170_v22 }
  0x47   :  { %1522 = vmatprep.subr.mxu1 %v1726_v3  ;;  %1533 = vmatprep.subr.mxu0 %v1726_v3 }
  0x48   :  { %1523 = vmatpush3.msra.mxu1 %v1960_v1  ;;  %1534 = vmatpush3.msra.mxu0 %v177_v23 }
  0x49   :  { %1524 = vmatprep.subr.mxu1 %v1726_v3  ;;  %1535 = vmatprep.subr.mxu0 %v1726_v3 }
  0x4a   :  { %1525 = vmatpush3.msra.mxu1 %v1984_v19  ;;  %1536 = vmatpush3.msra.mxu0 %v184_v24 }
  0x4b   :  { %1526 = vmatprep.subr.mxu1 %v1726_v3  ;;  %1537 = vmatprep.subr.mxu0 %v1726_v3 }
  0x4c   :  { %1527 = vmatpush3.msra.mxu1 %v1995_v34  ;;  %1528 = vmatprep.mubr.msk.f32.mxu1 %vm1727_vm0, %v1726_v3 }
  0x4d   :  { %1538 = vmatpush3.msra.mxu0 %v191_v26  ;;  %1529 = vmatmul.mubr.f32.vlgmr.msra.gmra.mxu1 %v159_v46 }
  0x4e   :  { %1539 = vmatprep.subr.mxu0 %v1726_v3  ;;  %1566 = vmatprep.subr.mxu1 %v1726_v3 }
  0x4f   :  { %1540 = vmatpush3.msra.mxu0 %v198_v28  ;;  %1567 = vmatpush3.msra.mxu1 %v1806_v4  ;;  %v46_v4 = vld [vmem:[%s2366_s2] sm:$0xff] }
  0x50   :  { %1541 = vmatprep.subr.mxu0 %v1726_v3  ;;  %1568 = vmatprep.subr.mxu1 %v1726_v3  ;;  %48 = vst.msk [vmem:[#allocation2] sm:$0xff] %vm47_vm2, %v46_v4 }
  0x51   :  { %1542 = vmatpush3.msra.mxu0 %v205_v36  ;;  %1569 = vmatpush3.msra.mxu1 %v1808_v5  ;;  %v727_v5 = vld [vmem:[%s2367_s3 + $0x18] sm:$0xff] }
  0x52   :  { %1543 = vmatprep.subr.mxu0 %v1726_v3  ;;  %1570 = vmatprep.subr.mxu1 %v1726_v3 }
  0x53   :  { %1544 = vmatpush3.msra.mxu0 %v212_v47  ;;  %1571 = vmatpush3.msra.mxu1 %v1810_v6  ;;  %v726_v6 = vld [vmem:[%s2367_s3 + $0x10] sm:$0xff] }
  0x54   :  { %1545 = vmatprep.subr.mxu0 %v1726_v3  ;;  %1572 = vmatprep.subr.mxu1 %v1726_v3 }
  0x55   :  { %1546 = vmatpush3.msra.mxu0 %v219_v53  ;;  %1573 = vmatpush3.msra.mxu1 %v1822_v10  ;;  %v725_v10 = vld [vmem:[%s2367_s3 + $0x8] sm:$0xff]  ;;  %v808_v53 = vld [vmem:[%s2369_s5] sm:$0xff] }
  0x56   :  { %1547 = vmatprep.subr.mxu0 %v1726_v3  ;;  %1574 = vmatprep.subr.mxu1 %v1726_v3 }
  0x57   :  { %1548 = vmatpush3.msra.mxu0 %v226_v57  ;;  %1575 = vmatpush3.msra.mxu1 %v1824_v11  ;;  %v724_v11 = vld [vmem:[%s2367_s3] sm:$0xff] }
  0x58   :  { %1549 = vmatprep.subr.mxu0 %v1726_v3  ;;  %1576 = vmatprep.subr.mxu1 %v1726_v3  ;;  %v57_v36 = vld [vmem:[#allocation2] sm:$0xff] }
  0x59   :  { %1550 = vmatpush3.msra.mxu0 %v233_v7  ;;  %1577 = vmatpush3.msra.mxu1 %v1826_v12  ;;  %v811_v12 = vld [vmem:[%s2369_s5 + $0x18] sm:$0xff] }
  0x5a   :  { %1551 = vmatprep.subr.mxu0 %v1726_v3  ;;  %1578 = vmatprep.subr.mxu1 %v1726_v3 }
  0x5b   :  { %1552 = vmatpush3.msra.mxu0 %v240_v31  ;;  %1579 = vmatpush3.msra.mxu1 %v1845_v17  ;;  %v964_v31 = vld [vmem:[%s2370_s6 + $0x10] sm:$0xff] }
  0x5c   :  { %1553 = vmatprep.subr.mxu0 %v1726_v3  ;;  %1580 = vmatprep.subr.mxu1 %v1726_v3 }
  0x5d   :  { %1554 = vmatpush3.msra.mxu0 %v247_v39  ;;  %1581 = vmatpush3.msra.mxu1 %v1864_v25  ;;  %v962_v39 = vld [vmem:[%s2370_s6] sm:$0xff] }
  0x5e   :  { %1555 = vmatprep.subr.mxu0 %v1726_v3  ;;  %1582 = vmatprep.subr.mxu1 %v1726_v3 }
  0x5f   :  { %1556 = vmatpush3.msra.mxu0 %v254_v49  ;;  %1583 = vmatpush3.msra.mxu1 %v1868_v27 }
  0x60   :  { %1557 = vmatprep.subr.mxu0 %v1726_v3  ;;  %1584 = vmatprep.subr.mxu1 %v1726_v3 }
  0x61   :  { %1558 = vmatpush3.msra.mxu0 %v261_v59  ;;  %1585 = vmatpush3.msra.mxu1 %v1899_v40 }
  0x62   :  { %1559 = vmatprep.subr.mxu0 %v1726_v3  ;;  %1586 = vmatprep.subr.mxu1 %v1726_v3 }
  0x63   :  { %1560 = vmatpush3.msra.mxu0 %v268_v13  ;;  %1587 = vmatpush3.msra.mxu1 %v1902_v41  ;;  %v1121_v13 = vld [vmem:[%s2372_s8 + $0x30] sm:$0xff] }
  0x64   :  { %1561 = vmatprep.subr.mxu0 %v1726_v3  ;;  %1588 = vmatprep.subr.mxu1 %v1726_v3 }
  0x65   :  { %1562 = vmatpush3.msra.mxu0 %v275_v29  ;;  %1563 = vmatprep.mubr.msk.f32.mxu0 %vm1727_vm0, %v1726_v3  ;;  %v1118_v29 = vld [vmem:[%s2372_s8 + $0x18] sm:$0xff] }
  0x66   :  { %1589 = vmatpush3.msra.mxu1 %v1927_v52  ;;  %1564 = vmatmul.mubr.msk.f32.vlgmr.msra.gmra.mxu0 %vm56_vm1, %v1728_v0  ;;  %v809_v52 = vld [vmem:[%s2369_s5 + $0x8] sm:$0xff] }
  0x67   :  { %1590 = vmatprep.subr.mxu1 %v1726_v3  ;;  %1598 = vmatprep.mubr.msk.f32.mxu1 %vm1727_vm0, %v1726_v3 }
  0x68   :  { %1591 = vmatpush3.msra.mxu1 %v1950_v61  ;;  %1601 = vmatprep.subr.mxu0 %v1726_v3 }
  0x69   :  { %1592 = vmatprep.subr.mxu1 %v1726_v3  ;;  %1609 = vmatprep.mubr.msk.f32.mxu0 %vm1727_vm0, %v1726_v3 }
  0x6a   :  { %1593 = vmatpush3.msra.mxu1 %v1960_v1  ;;  %1602 = vmatpush3.msra.mxu0 %v727_v5 }
  0x6b   :  { %1594 = vmatprep.subr.mxu1 %v1726_v3  ;;  %1603 = vmatprep.subr.mxu0 %v1726_v3 }
  0x6c   :  { %1595 = vmatpush3.msra.mxu1 %v1984_v19  ;;  %1604 = vmatpush3.msra.mxu0 %v726_v6  ;;  %v1043_v19 = vld [vmem:[%s2371_s7 + $0x18] sm:$0xff] }
  0x6d   :  { %1596 = vmatprep.subr.mxu1 %v1726_v3  ;;  %1605 = vmatprep.subr.mxu0 %v1726_v3 }
  0x6e   :  { %1597 = vmatpush3.msra.mxu1 %v1995_v34  ;;  %1606 = vmatpush3.msra.mxu0 %v725_v10  ;;  %v1041_v34 = vld [vmem:[%s2371_s7 + $0x8] sm:$0xff] }
  0x6f   :  { %1599 = vmatmul.mubr.msk.f32.vlgmr.msra.gmra.mxu1 %vm56_vm1, %v1728_v0  ;;  %1612 = vmatprep.subr.mxu1 %v1726_v3 }
  0x70   :  { %1620 = vmatprep.mubr.msk.f32.mxu1 %vm1727_vm0, %v1726_v3  ;;  %1607 = vmatprep.subr.mxu0 %v1726_v3 }
  0x71   :  { %1608 = vmatpush3.msra.mxu0 %v724_v11  ;;  %1613 = vmatpush3.msra.mxu1 %v811_v12 }
  0x72   :  { %1623 = vmatprep.subr.mxu0 %v1726_v3  ;;  %1614 = vmatprep.subr.mxu1 %v1726_v3 }
  0x73   :  { %1615 = vmatpush3.msra.mxu1 %v810_v15 }
  0x74   :  { %1616 = vmatprep.subr.mxu1 %v1726_v3 }
  0x75   :  { %1617 = vmatpush3.msra.mxu1 %v809_v52 }
  0x76   :  { %1618 = vmatprep.subr.mxu1 %v1726_v3 }
  0x77   :  { %1619 = vmatpush3.msra.mxu1 %v808_v53 }
  0x78   :  { %1634 = vmatprep.subr.mxu1 %v1726_v3 }
  0xe4   :  { %v163_v16 = vpop.f32.mrf.mxu0 }
  0xe6   :  { %v1425_v17 = vpop.f32.mrf.mxu0 }
  0xeb   :  { %v314_v18 = vpop.f32.mrf.mxu1 }
  0xec   :  { %v315_v26 = vadd.f32 %v314_v18, %v163_v16 }
  0xed   :  { %v1460_v20 = vpop.f32.mrf.mxu1 }
 0x104   :  { %v418_v21 = vpop.f32.mrf.mxu0 }
 0x105   :  { %v419_v28 = vadd.f32 %v418_v21, %v315_v26 }
 0x106   :  { %v1495_v22 = vpop.f32.mrf.mxu0 }
 0x10d   :  { %v507_v23 = vpop.f32.mrf.mxu1 }
 0x10e   :  { %v508_v30 = vadd.f32 %v507_v23, %v419_v28 }
 0x10f   :  { %v1530_v24 = vpop.f32.mrf.mxu1 }
 0x126   :  { %v626_v25 = vpop.f32.mrf.mxu0 }
 0x127   :  { %v627_v35 = vadd.f32 %v626_v25, %v508_v30 }
 0x128   :  { %v1565_v27 = vpop.f32.mrf.mxu0 }
 0x12f   :  { %v713_v40 = vpop.f32.mrf.mxu1 }
 0x130   :  { %v714_v41 = vadd.f32 %v713_v40, %v627_v35 }
 0x131   :  { %v1600_v43 = vpop.f32.mrf.mxu1 }
 0x132   :  { %v717_v47 = vadd.f32 %v714_v41, %v57_v36 }
 0x134   :  { %719 = vst.msk [vmem:[#allocation2] sm:$0xff] %vm47_vm2, %v717_v47 }
 0x13b   :  { %v723_v48 = vld [vmem:[#allocation2] sm:$0xff] }
 0x13c   :  { %1610 = vmatmul.mubr.msk.f32.vlgmr.msra.gmra.mxu0 %vm47_vm2, %v723_v48 }
 0x13d   :  { %1624 = vmatpush3.msra.mxu0 %v811_v12  ;;  %1631 = vmatprep.mubr.msk.f32.mxu0 %vm1727_vm0, %v1726_v3 }
 0x13e   :  { %1625 = vmatprep.subr.mxu0 %v1726_v3 }
 0x13f   :  { %1626 = vmatpush3.msra.mxu0 %v810_v15 }
 0x140   :  { %1627 = vmatprep.subr.mxu0 %v1726_v3 }
 0x141   :  { %1628 = vmatpush3.msra.mxu0 %v809_v52 }
 0x142   :  { %1629 = vmatprep.subr.mxu0 %v1726_v3 }
 0x143   :  { %1630 = vmatpush3.msra.mxu0 %v808_v53 }
 0x144   :  { %1645 = vmatprep.subr.mxu0 %v1726_v3 }
 0x1fc   :  { %v804_v56 = vpop.f32.mrf.mxu0 }
 0x1fd   :  { %v805_v57 = vadd.f32 %v1246_v55, %v804_v56 }
 0x1fe   :  { %v1611_v58 = vpop.f32.mrf.mxu0 }
 0x1ff   :  { %1621 = vmatmul.mubr.msk.f32.vlgmr.msra.gmra.mxu1 %vm47_vm2, %v805_v57 }
 0x200   :  { %1642 = vmatprep.mubr.msk.f32.mxu1 %vm1727_vm0, %v1726_v3  ;;  %1635 = vmatpush3.msra.mxu1 %v965_v9 }
 0x201   :  { %1636 = vmatprep.subr.mxu1 %v1726_v3 }
 0x202   :  { %1637 = vmatpush3.msra.mxu1 %v964_v31 }
 0x203   :  { %1638 = vmatprep.subr.mxu1 %v1726_v3 }
 0x204   :  { %1639 = vmatpush3.msra.mxu1 %v963_v33 }
 0x205   :  { %1640 = vmatprep.subr.mxu1 %v1726_v3 }
 0x206   :  { %1641 = vmatpush3.msra.mxu1 %v962_v39 }
 0x207   :  { %1656 = vmatprep.subr.mxu1 %v1726_v3 }
 0x2bf   :  { %v881_v61 = vpop.f32.mrf.mxu1 }
 0x2c0   :  { %v885_v63 = vsub.f32 %v805_v57, %v881_v61 }
 0x2c1   :  { %v1622_v1 = vpop.f32.mrf.mxu1 }
 0x2c2   :  { %v886_v7 = vmul.f32 %v885_v63, %v885_v63 }
 0x2c4   :  { %1632 = vmatmul.mubr.msk.f32.vlgmr.msra.gmra.mxu0 %vm47_vm2, %v886_v7 }
 0x2c5   :  { %1653 = vmatprep.mubr.msk.f32.mxu0 %vm1727_vm0, %v1726_v3  ;;  %1646 = vmatpush3.msra.mxu0 %v1043_v19 }
 0x2c6   :  { %1647 = vmatprep.subr.mxu0 %v1726_v3 }
 0x2c7   :  { %1648 = vmatpush3.msra.mxu0 %v1042_v32 }
 0x2c8   :  { %1649 = vmatprep.subr.mxu0 %v1726_v3 }
 0x2c9   :  { %1650 = vmatpush3.msra.mxu0 %v1041_v34 }
 0x2ca   :  { %1651 = vmatprep.subr.mxu0 %v1726_v3 }
 0x2cb   :  { %1652 = vmatpush3.msra.mxu0 %v1040_v42 }
 0x384   :  { %v956_v46 = vpop.f32.mrf.mxu0 }
 0x385   :  { %v957_v49 = vadd.f32 1e-05, %v956_v46 }
 0x386   :  { %v1633_v50 = vpop.f32.mrf.mxu0 }
 0x387   :  { %1680 = vrsqrt.f32 %v957_v49 }
 0x394   :  { %v1681_v59 = vpop.eup %1680 }
 0x395   :  { %v961_v60 = vmul.f32 %v1681_v59, %v885_v63 }
 0x397   :  { %1643 = vmatmul.mubr.msk.f32.vlgmr.msra.gmra.mxu1 %vm47_vm2, %v961_v60  ;;  %1654 = vmatmul.mubr.msk.f32.vlgmr.msra.gmra.mxu0 %vm47_vm2, %v961_v60 }
 0x398   :  { %1657 = vmatpush3.msra.mxu1 %v1122_v2  ;;  %1672 = vmatprep.mubr.msk.f32.mxu1 %vm1727_vm0, %v1726_v3 }
 0x399   :  { %1658 = vmatprep.subr.mxu1 %v1726_v3 }
 0x39a   :  { %1659 = vmatpush3.msra.mxu1 %v1121_v13 }
 0x39b   :  { %1660 = vmatprep.subr.mxu1 %v1726_v3 }
 0x39c   :  { %1661 = vmatpush3.msra.mxu1 %v1120_v8 }
 0x39d   :  { %1662 = vmatprep.subr.mxu1 %v1726_v3 }
 0x39e   :  { %1663 = vmatpush3.msra.mxu1 %v1119_v14 }
 0x39f   :  { %1664 = vmatprep.subr.mxu1 %v1726_v3 }
 0x3a0   :  { %1665 = vmatpush3.msra.mxu1 %v1118_v29 }
 0x3a1   :  { %1666 = vmatprep.subr.mxu1 %v1726_v3 }
 0x3a2   :  { %1667 = vmatpush3.msra.mxu1 %v1117_v37 }
 0x3a3   :  { %1668 = vmatprep.subr.mxu1 %v1726_v3 }
 0x3a4   :  { %1669 = vmatpush3.msra.mxu1 %v1116_v38 }
 0x3a5   :  { %1670 = vmatprep.subr.mxu1 %v1726_v3 }
 0x3a6   :  { %1671 = vmatpush3.msra.mxu1 %v1115_v44 }
 0x457   :  { %v1035_v45 = vpop.f32.mrf.mxu1  ;;  %v1110_v51 = vpop.f32.mrf.mxu0 }
 0x458   :  { %v1039_v54 = vmax.f32 %v1035_v45, 0.0 }
 0x459   :  { %v1644_v62 = vpop.f32.mrf.mxu1  ;;  %v1655_v0 = vpop.f32.mrf.mxu0 }
 0x45a   :  { %v1114_v4 = vmul.f32 %v1110_v51, %v1039_v54 }
 0x45c   :  { %1673 = vmatmul.mubr.msk.f32.vlgmr.msra.gmra.mxu1 %vm1130_vm3, %v1114_v4 }
 0x45d   :  { %1693 = shalt.err (!%p1690_p4)
}
 0x45e   :  { %1222 = dma.vmem_to_hbm [thread:$0]  %s1220_s20, 128, %s2375_s11, [#allocation3]   ;;  %v1252_v3 = vld [vmem:[%s2373_s9] ss:$0 sm:$0xff] }
 0x45f   :  { %v1254_v6 = vld [vmem:[%s2374_s10] ss:$0 sm:$0xff]  ;;  %s1730_s26 = smov [#allocation4]  }
 0x460   :  { %s1229_s27 = sshll.u32 %s1730_s26, 4  ;;  %s1230_s27 = int_to_ptr.vmem [resolvable:$true] %s1229_s27 }
 0x461   :  { %s1702_s6 = scalar_lea.vmem %s1230_s27, 128  ;;  %p1707_p6 = scmp.lt.s32.totalorder %s1230_s27, %s1230_s27 }
 0x462   :  { %p1703_p5 = scmp.ne.s32.totalorder %s1230_s27, %s1702_s6  ;;  %p1708_p7 = scmp.lt.s32.totalorder %s1702_s6, %s1702_s6 }
 0x464   :  { %p1709_p8 = por %p1708_p7, %p1707_p6 }
 0x466   :  { %p1710_p9 = pnand %p1709_p8, %p1703_p5 }
 0x51c   :  { %v1200_v5 = vpop.f32.mrf.mxu1 }
 0x51d   :  { %v1201_v10 = vadd.f32 %v1252_v3, %v1200_v5 }
 0x51e   :  { %v1674_v11 = vpop.f32.mrf.mxu1 }
 0x51f   :  { %v1211_v12 = vmul.f32 %v1254_v6, %v1201_v10 }
 0x521   :  { %1212 = vst.msk [vmem:[#allocation4] sm:$0xff] %vm47_vm2, %v1211_v12 }
 0x522   :  { %1713 = shalt.err (!%p1710_p9)
}
 0x523   :  { %1232 = dma.vmem_to_hbm [thread:$0]  %s1230_s27, 128, %s2376_s12, [#allocation5]  }
 0x524   :  { %1722 = dma.done.wait [#allocation3], 128  }
 0x525   :  { %1723 = vsyncadd [#allocation3], 4294967168 }
 0x526   :  { %1724 = dma.done.wait [#allocation5], 128  }
 0x527   :  { %1725 = vsyncadd [#allocation5], 4294967168 }
 0x528   :  { %1239 = vsyncpa [#allocation3], 1 }
 0x529   :  { %1240 = vsyncpa [#allocation5], 1 }

</bundles_post_ra>
